<compile_context>
chip_gen: v6e
topology: v6e:2x2x1
jax: 0.10.0
libtpu: 0.0.40
codegen_flags: <defaults>
</compile_context>

<pallas_src>
import jax
import jax.numpy as jnp
import numpy as np
from jax.experimental import pallas as pl
from jax.experimental.pallas import tpu as pltpu


def mix_attention_kernel(x_ref, w1a_ref, w1b_ref, w2_ref,
                         c1a_ref, c1b_ref, c2a_ref, c3_ref, o_ref):
    bt, _, hw = x_ref.shape
    inv_hw = 1.0 / hw

    # ---- spatial (lane) reductions, streamed per batch element so no
    # whole-block value stays live across the kernel.  The block's last dim
    # is the true HW (no wrapper padding); Mosaic masks unaligned lane
    # padding internally, so no explicit mask is needed. ----
    sums, maxs = [], []
    for b in range(bt):
        xb = x_ref[b]                                  # (C, HW)
        sums.append(jnp.sum(xb, axis=1))
        maxs.append(jnp.max(xb, axis=1))
    avg = jnp.stack(sums, axis=0) * inv_hw             # (Bt, C)
    xmax = jnp.stack(maxs, axis=0)                     # (Bt, C)

    # ---- stage-1 gate MLP (split-weight form: no (2C,) concat) ----
    h1 = jnp.maximum(
        jnp.dot(avg, w1a_ref[...], preferred_element_type=jnp.float32)
        + jnp.dot(xmax, w1b_ref[...], preferred_element_type=jnp.float32),
        0.0)                                           # (Bt, C//r)
    y = jax.nn.sigmoid(
        jnp.dot(h1, w2_ref[...], preferred_element_type=jnp.float32))  # (Bt, C)

    # ---- stage-2 gate.  Exact pooling fusion: out1 = x*y, y > 0 constant
    # over HW, so avg(out1) = y*avg(x), max(out1) = y*max(x). ----
    avg2 = y * avg
    mx2 = y * xmax
    t = jnp.maximum(
        jnp.dot(avg2, c1a_ref[...], preferred_element_type=jnp.float32)
        + jnp.dot(mx2, c1b_ref[...], preferred_element_type=jnp.float32),
        0.0)                                           # (Bt, C)
    z = jax.nn.sigmoid(
        jnp.dot(t, c2a_ref[...], preferred_element_type=jnp.float32))  # (Bt, C)
    gate = y * z                                       # (Bt, C)

    # ---- conv3 (1x1) + residual, re-reading x_ref per batch element.
    # (Per-b (C,C)@(C,HW) matmuls; folding the batch into the lane dim is
    # neutral while the kernel is HBM-bound, so keep the simple form.) ----
    c3 = c3_ref[...]                                   # (C, C)
    for b in range(bt):
        xb = x_ref[b]                                  # (C, HW)
        gb = gate[b][:, None]                          # (C, 1) broadcast over HW
        o_ref[b] = jnp.dot(c3, xb * gb,
                           preferred_element_type=jnp.float32) + xb


def _round_up(v, m):
    return ((v + m - 1) // m) * m


def _vmem_capacity_bytes():
    # Generation-aware sizing (v7x: 64 MiB/TC; v5e/v6e: 128 MiB).
    try:
        return int(pltpu.get_tpu_info().vmem_capacity_bytes)
    except Exception:
        return 64 << 20           # conservative fallback


def _vmem_tile_bytes(shape, dtype_bytes=4):
    s = list(shape)
    if len(s) >= 1:
        s[-1] = _round_up(s[-1], 128)
    if len(s) >= 2:
        s[-2] = _round_up(s[-2], 8)
    n = 1
    for d in s:
        n *= d
    return n * dtype_bytes


def _choose_block_b(B, per_batch_vmem, budget, max_unroll=8):
    """Largest divisor of B whose block fits the per-buffer budget, with a
    modest static-unroll cap and (for v7x's two TensorCores) a preference for
    an even grid of >= 2 steps."""
    divisors = [d for d in range(1, B + 1) if B % d == 0]

    def fits(bt, need_even):
        steps = B // bt
        if bt * per_batch_vmem > budget or bt > max_unroll:
            return False
        if need_even and B >= 2 and (steps < 2 or steps % 2 != 0):
            return False
        return True

    for need_even in (True, False):
        ok = [d for d in divisors if fits(d, need_even)]
        if ok:
            return max(ok)
    return 1


def mix_attention(x, fc1_w, fc2_w, conv1_w, conv2_w, conv3_w, *, block_b=None):
    B, C, H, W = x.shape
    HW = H * W
    # No pad / slice passes: reshape is free, last block dim == full HW.
    xf = x.reshape(B, C, HW).astype(jnp.float32)

    # Pre-slice / pre-transpose the 1x1-conv weights once (outside the kernel)
    # so the gate MLP runs as (Bt, C)-row GEMMs with no in-kernel concat.
    f32 = jnp.float32
    w1a = fc1_w[:, :C].T.astype(f32)      # (C, C//r)   fc1, avg half
    w1b = fc1_w[:, C:].T.astype(f32)      # (C, C//r)   fc1, max half
    w2 = fc2_w[:C, :].T.astype(f32)       # (C//r, C)   fc2, first C gate channels
    c1a = conv1_w[:, :C].T.astype(f32)    # (C, C)      conv1, avg half
    c1b = conv1_w[:, C:].T.astype(f32)    # (C, C)      conv1, max half
    c2a = conv2_w[:, :C].T.astype(f32)    # (C, C)      conv2, first-C input slice
    c3 = conv3_w.astype(f32)              # (C, C)
    weights = (w1a, w1b, w2, c1a, c1b, c2a, c3)

    vmem_cap = _vmem_capacity_bytes()
    budget = max(2 << 20, vmem_cap // 8)         # ~16 MiB on v5e/v6e, ~8 MiB on v7x
    per_batch_vmem = _vmem_tile_bytes((C, HW))

    if block_b is not None:
        assert B % block_b == 0, "block_b must divide the batch size"
        Bt = block_b
    else:
        Bt = _choose_block_b(B, per_batch_vmem, budget)

    block_vmem = Bt * per_batch_vmem
    # Fallback for huge C*HW: single-buffer the streaming in/out so one batch
    # element still fits v7x's 64 MiB VMEM (see TODO about HW-chunk pipeline).
    x_buffers = 1 if block_vmem > budget else None        # None -> default (2)
    n_x_bufs = 1 if x_buffers == 1 else 2

    weight_vmem = sum(_vmem_tile_bytes(w.shape) for w in weights)
    vmem_limit = 2 * n_x_bufs * block_vmem + weight_vmem + (2 << 20)
    vmem_limit = int(min(max(vmem_limit, 8 << 20), int(0.85 * vmem_cap)))

    grid = (B // Bt,)

    def _call(allow_buffered):
        def spec(shape, index_map, buffers):
            if allow_buffered and buffers is not None:
                try:
                    return pl.BlockSpec(shape, index_map,
                                        pipeline_mode=pl.Buffered(buffers))
                except Exception:
                    pass
            return pl.BlockSpec(shape, index_map)

        x_spec = spec((Bt, C, HW), lambda b: (b, 0, 0), x_buffers)
        o_spec = spec((Bt, C, HW), lambda b: (b, 0, 0), x_buffers)
        # Weights are constant across the grid -> single-buffer them.
        w_specs = [spec(w.shape, (lambda nd: (lambda b: (0,) * nd))(w.ndim), 1)
                   for w in weights]

        return pl.pallas_call(
            mix_attention_kernel,
            out_shape=jax.ShapeDtypeStruct((B, C, HW), jnp.float32),
            grid_spec=pltpu.PrefetchScalarGridSpec(
                num_scalar_prefetch=0,
                grid=grid,
                in_specs=[x_spec] + w_specs,
                out_specs=o_spec,
            ),
            compiler_params=pltpu.CompilerParams(
                dimension_semantics=("parallel",),
                vmem_limit_bytes=vmem_limit),
        )(xf, *weights)

    try:
        out = _call(True)
    except Exception:
        # Fallback for jax versions without pipeline_mode=pl.Buffered support.
        out = _call(False)

    return out.reshape(B, C, H, W)


def mix_attention_reference(x, fc1_w, fc2_w, c1_w, c2_w, c3_w):
    # Pure-JAX reference implementing the same (bug-resolved) semantics.
    B, C, H, W = x.shape
    xf = x.reshape(B, C, -1).astype(jnp.float32)
    pooled = jnp.concatenate([xf.mean(-1), xf.max(-1)], axis=1)       # (B, 2C)
    h1 = jnp.maximum(pooled @ fc1_w.T, 0.0)                            # (B, C//r)
    y = jax.nn.sigmoid(h1 @ fc2_w.T)[:, :C]                            # (B, C)
    out1 = xf * y[:, :, None]
    pooled2 = jnp.concatenate([out1.mean(-1), out1.max(-1)], axis=1)   # (B, 2C)
    t = jnp.maximum(pooled2 @ c1_w.T, 0.0)                             # (B, C)
    z = jax.nn.sigmoid(t @ c2_w[:, :C].T)                              # (B, C)
    out2 = out1 * z[:, :, None]
    out = jnp.einsum("oc,bcs->bos", c3_w, out2) + xf
    return out.reshape(B, C, H, W)


if __name__ == "__main__":
    master = jax.random.PRNGKey(0)

    def run_case(case_key, B, C, H, W, r):
        k = jax.random.split(case_key, 6)
        x = jax.random.normal(k[0], (B, C, H, W), jnp.float32)
        # Parameter shapes follow the module's __init__ (1x1 convs -> dense mats).
        fc1_w = 0.1 * jax.random.normal(k[1], (C // r, 2 * C), jnp.float32)
        fc2_w = 0.1 * jax.random.normal(k[2], (2 * C, C // r), jnp.float32)
        conv1_w = 0.1 * jax.random.normal(k[3], (C, 2 * C), jnp.float32)
        conv2_w = 0.1 * jax.random.normal(k[4], (C, 2 * C), jnp.float32)
        conv3_w = 0.1 * jax.random.normal(k[5], (C, C), jnp.float32)
        out = jax.block_until_ready(
            mix_attention(x, fc1_w, fc2_w, conv1_w, conv2_w, conv3_w))
        ref = mix_attention_reference(x, fc1_w, fc2_w, conv1_w, conv2_w, conv3_w)
        assert out.shape == (B, C, H, W)
        assert np.allclose(np.asarray(out), np.asarray(ref),
                           rtol=1e-4, atol=1e-4), f"mismatch for {(B, C, H, W)}"

    k1, k2, k3 = jax.random.split(master, 3)
    run_case(k1, B=2, C=16, H=16, W=16, r=8)   # HW multiple of 128
    run_case(k2, B=2, C=16, H=10, W=10, r=8)   # HW=100, unpadded full-extent block
    run_case(k3, B=4, C=16, H=12, W=12, r=8)   # HW=144, batch tile Bt=2, even grid
    print("KERNEL_OK")
</pallas_src>

<mosaic_0001>
module attributes {stable_mosaic.version = 11 : i64} {
  func.func @mix_attention_kernel(%arg0: i32, %arg1: memref<1x16x256xf32, #tpu.memory_space<vmem>>, %arg2: memref<16x2xf32, #tpu.memory_space<vmem>>, %arg3: memref<16x2xf32, #tpu.memory_space<vmem>>, %arg4: memref<2x16xf32, #tpu.memory_space<vmem>>, %arg5: memref<16x16xf32, #tpu.memory_space<vmem>>, %arg6: memref<16x16xf32, #tpu.memory_space<vmem>>, %arg7: memref<16x16xf32, #tpu.memory_space<vmem>>, %arg8: memref<16x16xf32, #tpu.memory_space<vmem>>, %arg9: memref<1x16x256xf32, #tpu.memory_space<vmem>>) attributes {dimension_semantics = [#tpu.dimension_semantics<parallel>], iteration_bounds = array<i64: 2>, scalar_prefetch = 0 : i64, scratch_operands = 0 : i64, tpu.core_type = #tpu.core_type<tc>, window_params = [{transform_indices = @transform_0, window_bounds = array<i64: 1, 16, 256>}, {pipeline_mode = #tpu.pipeline_mode<synchronous>, transform_indices = @transform_1, window_bounds = array<i64: 16, 2>}, {pipeline_mode = #tpu.pipeline_mode<synchronous>, transform_indices = @transform_2, window_bounds = array<i64: 16, 2>}, {pipeline_mode = #tpu.pipeline_mode<synchronous>, transform_indices = @transform_3, window_bounds = array<i64: 2, 16>}, {pipeline_mode = #tpu.pipeline_mode<synchronous>, transform_indices = @transform_4, window_bounds = array<i64: 16, 16>}, {pipeline_mode = #tpu.pipeline_mode<synchronous>, transform_indices = @transform_5, window_bounds = array<i64: 16, 16>}, {pipeline_mode = #tpu.pipeline_mode<synchronous>, transform_indices = @transform_6, window_bounds = array<i64: 16, 16>}, {pipeline_mode = #tpu.pipeline_mode<synchronous>, transform_indices = @transform_7, window_bounds = array<i64: 16, 16>}, {transform_indices = @transform_8, window_bounds = array<i64: 1, 16, 256>}]} {
    %c0 = arith.constant 0 : index
    %c0_0 = arith.constant 0 : index
    %c0_1 = arith.constant 0 : index
    %0 = vector.load %arg1[%c0, %c0_0, %c0_1] : memref<1x16x256xf32, #tpu.memory_space<vmem>>, vector<1x16x256xf32>
    %1 = vector.shape_cast %0 : vector<1x16x256xf32> to vector<16x256xf32>
    %cst = arith.constant dense<0.000000e+00> : vector<16xf32>
    %2 = vector.multi_reduction <add>, %1, %cst [1] : vector<16x256xf32> to vector<16xf32>
    %cst_2 = arith.constant dense<0xFF800000> : vector<16xf32>
    %3 = vector.multi_reduction <maximumf>, %1, %cst_2 [1] : vector<16x256xf32> to vector<16xf32>
    %4 = vector.shape_cast %2 : vector<16xf32> to vector<1x16xf32>
    %cst_3 = arith.constant 3.906250e-03 : f32
    %5 = vector.broadcast %cst_3 : f32 to vector<1x16xf32>
    %6 = arith.mulf %4, %5 : vector<1x16xf32>
    %7 = vector.shape_cast %3 : vector<16xf32> to vector<1x16xf32>
    %c0_4 = arith.constant 0 : index
    %c0_5 = arith.constant 0 : index
    %8 = vector.load %arg2[%c0_4, %c0_5] : memref<16x2xf32, #tpu.memory_space<vmem>>, vector<16x2xf32>
    %cst_6 = arith.constant dense<0.000000e+00> : vector<1x2xf32>
    %9 = tpu.matmul %6, %8, %cst_6 {dimension_numbers = #tpu.dot_dimension_numbers<[1], [0], [0], [1], [0, 0, 1, 1], [], []>} : vector<1x16xf32>, vector<16x2xf32>, vector<1x2xf32> -> vector<1x2xf32>
    %c0_7 = arith.constant 0 : index
    %c0_8 = arith.constant 0 : index
    %10 = vector.load %arg3[%c0_7, %c0_8] : memref<16x2xf32, #tpu.memory_space<vmem>>, vector<16x2xf32>
    %cst_9 = arith.constant dense<0.000000e+00> : vector<1x2xf32>
    %11 = tpu.matmul %7, %10, %cst_9 {dimension_numbers = #tpu.dot_dimension_numbers<[1], [0], [0], [1], [0, 0, 1, 1], [], []>} : vector<1x16xf32>, vector<16x2xf32>, vector<1x2xf32> -> vector<1x2xf32>
    %12 = arith.addf %9, %11 : vector<1x2xf32>
    %cst_10 = arith.constant 0.000000e+00 : f32
    %13 = vector.broadcast %cst_10 : f32 to vector<1x2xf32>
    %14 = arith.maximumf %12, %13 : vector<1x2xf32>
    %c0_11 = arith.constant 0 : index
    %c0_12 = arith.constant 0 : index
    %15 = vector.load %arg4[%c0_11, %c0_12] : memref<2x16xf32, #tpu.memory_space<vmem>>, vector<2x16xf32>
    %cst_13 = arith.constant dense<0.000000e+00> : vector<1x16xf32>
    %16 = tpu.matmul %14, %15, %cst_13 {dimension_numbers = #tpu.dot_dimension_numbers<[1], [0], [0], [1], [0, 0, 1, 1], [], []>} : vector<1x2xf32>, vector<2x16xf32>, vector<1x16xf32> -> vector<1x16xf32>
    %17 = arith.negf %16 : vector<1x16xf32>
    %18 = math.exp %17 : vector<1x16xf32>
    %cst_14 = arith.constant 1.000000e+00 : f32
    %19 = vector.broadcast %cst_14 : f32 to vector<1x16xf32>
    %20 = arith.addf %19, %18 : vector<1x16xf32>
    %21 = arith.divf %19, %20 : vector<1x16xf32>
    %22 = arith.mulf %21, %6 : vector<1x16xf32>
    %23 = arith.mulf %21, %7 : vector<1x16xf32>
    %c0_15 = arith.constant 0 : index
    %c0_16 = arith.constant 0 : index
    %24 = vector.load %arg5[%c0_15, %c0_16] : memref<16x16xf32, #tpu.memory_space<vmem>>, vector<16x16xf32>
    %cst_17 = arith.constant dense<0.000000e+00> : vector<1x16xf32>
    %25 = tpu.matmul %22, %24, %cst_17 {dimension_numbers = #tpu.dot_dimension_numbers<[1], [0], [0], [1], [0, 0, 1, 1], [], []>} : vector<1x16xf32>, vector<16x16xf32>, vector<1x16xf32> -> vector<1x16xf32>
    %c0_18 = arith.constant 0 : index
    %c0_19 = arith.constant 0 : index
    %26 = vector.load %arg6[%c0_18, %c0_19] : memref<16x16xf32, #tpu.memory_space<vmem>>, vector<16x16xf32>
    %cst_20 = arith.constant dense<0.000000e+00> : vector<1x16xf32>
    %27 = tpu.matmul %23, %26, %cst_20 {dimension_numbers = #tpu.dot_dimension_numbers<[1], [0], [0], [1], [0, 0, 1, 1], [], []>} : vector<1x16xf32>, vector<16x16xf32>, vector<1x16xf32> -> vector<1x16xf32>
    %28 = arith.addf %25, %27 : vector<1x16xf32>
    %cst_21 = arith.constant 0.000000e+00 : f32
    %29 = vector.broadcast %cst_21 : f32 to vector<1x16xf32>
    %30 = arith.maximumf %28, %29 : vector<1x16xf32>
    %c0_22 = arith.constant 0 : index
    %c0_23 = arith.constant 0 : index
    %31 = vector.load %arg7[%c0_22, %c0_23] : memref<16x16xf32, #tpu.memory_space<vmem>>, vector<16x16xf32>
    %cst_24 = arith.constant dense<0.000000e+00> : vector<1x16xf32>
    %32 = tpu.matmul %30, %31, %cst_24 {dimension_numbers = #tpu.dot_dimension_numbers<[1], [0], [0], [1], [0, 0, 1, 1], [], []>} : vector<1x16xf32>, vector<16x16xf32>, vector<1x16xf32> -> vector<1x16xf32>
    %33 = arith.negf %32 : vector<1x16xf32>
    %34 = math.exp %33 : vector<1x16xf32>
    %cst_25 = arith.constant 1.000000e+00 : f32
    %35 = vector.broadcast %cst_25 : f32 to vector<1x16xf32>
    %36 = arith.addf %35, %34 : vector<1x16xf32>
    %37 = arith.divf %35, %36 : vector<1x16xf32>
    %38 = arith.mulf %21, %37 : vector<1x16xf32>
    %c0_26 = arith.constant 0 : index
    %c0_27 = arith.constant 0 : index
    %39 = vector.load %arg8[%c0_26, %c0_27] : memref<16x16xf32, #tpu.memory_space<vmem>>, vector<16x16xf32>
    %c0_28 = arith.constant 0 : index
    %c0_29 = arith.constant 0 : index
    %c0_30 = arith.constant 0 : index
    %40 = vector.load %arg1[%c0_28, %c0_29, %c0_30] : memref<1x16x256xf32, #tpu.memory_space<vmem>>, vector<1x16x256xf32>
    %41 = vector.shape_cast %40 : vector<1x16x256xf32> to vector<16x256xf32>
    %42 = vector.shape_cast %38 : vector<1x16xf32> to vector<16xf32>
    %43 = vector.shape_cast %42 : vector<16xf32> to vector<16x1xf32>
    %44 = vector.broadcast %43 : vector<16x1xf32> to vector<16x256xf32>
    %45 = arith.mulf %41, %44 : vector<16x256xf32>
    %cst_31 = arith.constant dense<0.000000e+00> : vector<16x256xf32>
    %46 = tpu.matmul %39, %45, %cst_31 {dimension_numbers = #tpu.dot_dimension_numbers<[1], [0], [0], [1], [0, 0, 1, 1], [], []>} : vector<16x16xf32>, vector<16x256xf32>, vector<16x256xf32> -> vector<16x256xf32>
    %47 = arith.addf %46, %41 : vector<16x256xf32>
    %c0_32 = arith.constant 0 : index
    %c0_33 = arith.constant 0 : index
    %c0_34 = arith.constant 0 : index
    %48 = vector.load %arg9[%c0_32, %c0_33, %c0_34] : memref<1x16x256xf32, #tpu.memory_space<vmem>>, vector<1x16x256xf32>
    %49 = vector.shape_cast %48 : vector<1x16x256xf32> to vector<16x256xf32>
    %50 = vector.shape_cast %47 : vector<16x256xf32> to vector<1x16x256xf32>
    tpu.vector_store %arg9[%c0_32, %c0_33, %c0_34], %50 {strides = array<i32>} : memref<1x16x256xf32, #tpu.memory_space<vmem>>, vector<1x16x256xf32>,
    return
  }
  func.func @transform_0(%arg0: i32) -> (i32, i32, i32) {
    %c0_i32 = arith.constant 0 : i32
    %c0_i32_0 = arith.constant 0 : i32
    %c0_i32_1 = arith.constant 0 : i32
    return %arg0, %c0_i32, %c0_i32_0 : i32, i32, i32
  }
  func.func @transform_1(%arg0: i32) -> (i32, i32) {
    %c0_i32 = arith.constant 0 : i32
    %c0_i32_0 = arith.constant 0 : i32
    %c0_i32_1 = arith.constant 0 : i32
    return %c0_i32, %c0_i32_0 : i32, i32
  }
  func.func @transform_2(%arg0: i32) -> (i32, i32) {
    %c0_i32 = arith.constant 0 : i32
    %c0_i32_0 = arith.constant 0 : i32
    %c0_i32_1 = arith.constant 0 : i32
    return %c0_i32, %c0_i32_0 : i32, i32
  }
  func.func @transform_3(%arg0: i32) -> (i32, i32) {
    %c0_i32 = arith.constant 0 : i32
    %c0_i32_0 = arith.constant 0 : i32
    %c0_i32_1 = arith.constant 0 : i32
    return %c0_i32, %c0_i32_0 : i32, i32
  }
  func.func @transform_4(%arg0: i32) -> (i32, i32) {
    %c0_i32 = arith.constant 0 : i32
    %c0_i32_0 = arith.constant 0 : i32
    %c0_i32_1 = arith.constant 0 : i32
    return %c0_i32, %c0_i32_0 : i32, i32
  }
  func.func @transform_5(%arg0: i32) -> (i32, i32) {
    %c0_i32 = arith.constant 0 : i32
    %c0_i32_0 = arith.constant 0 : i32
    %c0_i32_1 = arith.constant 0 : i32
    return %c0_i32, %c0_i32_0 : i32, i32
  }
  func.func @transform_6(%arg0: i32) -> (i32, i32) {
    %c0_i32 = arith.constant 0 : i32
    %c0_i32_0 = arith.constant 0 : i32
    %c0_i32_1 = arith.constant 0 : i32
    return %c0_i32, %c0_i32_0 : i32, i32
  }
  func.func @transform_7(%arg0: i32) -> (i32, i32) {
    %c0_i32 = arith.constant 0 : i32
    %c0_i32_0 = arith.constant 0 : i32
    %c0_i32_1 = arith.constant 0 : i32
    return %c0_i32, %c0_i32_0 : i32, i32
  }
  func.func @transform_8(%arg0: i32) -> (i32, i32, i32) {
    %c0_i32 = arith.constant 0 : i32
    %c0_i32_0 = arith.constant 0 : i32
    %c0_i32_1 = arith.constant 0 : i32
    return %arg0, %c0_i32, %c0_i32_0 : i32, i32, i32
  }
}

module attributes {stable_mosaic.version = 11 : i64} {
  func.func @mix_attention_kernel(%arg0: i32, %arg1: memref<1x16x256xf32, #tpu.memory_space<vmem>>, %arg2: memref<16x2xf32, #tpu.memory_space<vmem>>, %arg3: memref<16x2xf32, #tpu.memory_space<vmem>>, %arg4: memref<2x16xf32, #tpu.memory_space<vmem>>, %arg5: memref<16x16xf32, #tpu.memory_space<vmem>>, %arg6: memref<16x16xf32, #tpu.memory_space<vmem>>, %arg7: memref<16x16xf32, #tpu.memory_space<vmem>>, %arg8: memref<16x16xf32, #tpu.memory_space<vmem>>, %arg9: memref<1x16x256xf32, #tpu.memory_space<vmem>>) attributes {dimension_semantics = [#tpu.dimension_semantics<parallel>], iteration_bounds = array<i64: 2>, scalar_prefetch = 0 : i64, scratch_operands = 0 : i64, tpu.core_type = #tpu.core_type<tc>, window_params = [{transform_indices = @transform_0, window_bounds = array<i64: 1, 16, 256>}, {pipeline_mode = #tpu.pipeline_mode<synchronous>, transform_indices = @transform_1, window_bounds = array<i64: 16, 2>}, {pipeline_mode = #tpu.pipeline_mode<synchronous>, transform_indices = @transform_2, window_bounds = array<i64: 16, 2>}, {pipeline_mode = #tpu.pipeline_mode<synchronous>, transform_indices = @transform_3, window_bounds = array<i64: 2, 16>}, {pipeline_mode = #tpu.pipeline_mode<synchronous>, transform_indices = @transform_4, window_bounds = array<i64: 16, 16>}, {pipeline_mode = #tpu.pipeline_mode<synchronous>, transform_indices = @transform_5, window_bounds = array<i64: 16, 16>}, {pipeline_mode = #tpu.pipeline_mode<synchronous>, transform_indices = @transform_6, window_bounds = array<i64: 16, 16>}, {pipeline_mode = #tpu.pipeline_mode<synchronous>, transform_indices = @transform_7, window_bounds = array<i64: 16, 16>}, {transform_indices = @transform_8, window_bounds = array<i64: 1, 16, 256>}]} {
    %c0 = arith.constant 0 : index
    %c0_0 = arith.constant 0 : index
    %c0_1 = arith.constant 0 : index
    %0 = vector.load %arg1[%c0, %c0_0, %c0_1] : memref<1x16x256xf32, #tpu.memory_space<vmem>>, vector<1x16x256xf32>
    %1 = vector.shape_cast %0 : vector<1x16x256xf32> to vector<16x256xf32>
    %cst = arith.constant dense<0.000000e+00> : vector<16xf32>
    %2 = vector.multi_reduction <add>, %1, %cst [1] : vector<16x256xf32> to vector<16xf32>
    %cst_2 = arith.constant dense<0xFF800000> : vector<16xf32>
    %3 = vector.multi_reduction <maximumf>, %1, %cst_2 [1] : vector<16x256xf32> to vector<16xf32>
    %4 = vector.shape_cast %2 : vector<16xf32> to vector<1x16xf32>
    %cst_3 = arith.constant 3.906250e-03 : f32
    %5 = vector.broadcast %cst_3 : f32 to vector<1x16xf32>
    %6 = arith.mulf %4, %5 : vector<1x16xf32>
    %7 = vector.shape_cast %3 : vector<16xf32> to vector<1x16xf32>
    %c0_4 = arith.constant 0 : index
    %c0_5 = arith.constant 0 : index
    %8 = vector.load %arg2[%c0_4, %c0_5] : memref<16x2xf32, #tpu.memory_space<vmem>>, vector<16x2xf32>
    %cst_6 = arith.constant dense<0.000000e+00> : vector<1x2xf32>
    %9 = tpu.matmul %6, %8, %cst_6 {dimension_numbers = #tpu.dot_dimension_numbers<[1], [0], [0], [1], [0, 0, 1, 1], [], []>} : vector<1x16xf32>, vector<16x2xf32>, vector<1x2xf32> -> vector<1x2xf32>
    %c0_7 = arith.constant 0 : index
    %c0_8 = arith.constant 0 : index
    %10 = vector.load %arg3[%c0_7, %c0_8] : memref<16x2xf32, #tpu.memory_space<vmem>>, vector<16x2xf32>
    %cst_9 = arith.constant dense<0.000000e+00> : vector<1x2xf32>
    %11 = tpu.matmul %7, %10, %cst_9 {dimension_numbers = #tpu.dot_dimension_numbers<[1], [0], [0], [1], [0, 0, 1, 1], [], []>} : vector<1x16xf32>, vector<16x2xf32>, vector<1x2xf32> -> vector<1x2xf32>
    %12 = arith.addf %9, %11 : vector<1x2xf32>
    %cst_10 = arith.constant 0.000000e+00 : f32
    %13 = vector.broadcast %cst_10 : f32 to vector<1x2xf32>
    %14 = arith.maximumf %12, %13 : vector<1x2xf32>
    %c0_11 = arith.constant 0 : index
    %c0_12 = arith.constant 0 : index
    %15 = vector.load %arg4[%c0_11, %c0_12] : memref<2x16xf32, #tpu.memory_space<vmem>>, vector<2x16xf32>
    %cst_13 = arith.constant dense<0.000000e+00> : vector<1x16xf32>
    %16 = tpu.matmul %14, %15, %cst_13 {dimension_numbers = #tpu.dot_dimension_numbers<[1], [0], [0], [1], [0, 0, 1, 1], [], []>} : vector<1x2xf32>, vector<2x16xf32>, vector<1x16xf32> -> vector<1x16xf32>
    %17 = arith.negf %16 : vector<1x16xf32>
    %18 = math.exp %17 : vector<1x16xf32>
    %cst_14 = arith.constant 1.000000e+00 : f32
    %19 = vector.broadcast %cst_14 : f32 to vector<1x16xf32>
    %20 = arith.addf %19, %18 : vector<1x16xf32>
    %21 = arith.divf %19, %20 : vector<1x16xf32>
    %22 = arith.mulf %21, %6 : vector<1x16xf32>
    %23 = arith.mulf %21, %7 : vector<1x16xf32>
    %c0_15 = arith.constant 0 : index
    %c0_16 = arith.constant 0 : index
    %24 = vector.load %arg5[%c0_15, %c0_16] : memref<16x16xf32, #tpu.memory_space<vmem>>, vector<16x16xf32>
    %cst_17 = arith.constant dense<0.000000e+00> : vector<1x16xf32>
    %25 = tpu.matmul %22, %24, %cst_17 {dimension_numbers = #tpu.dot_dimension_numbers<[1], [0], [0], [1], [0, 0, 1, 1], [], []>} : vector<1x16xf32>, vector<16x16xf32>, vector<1x16xf32> -> vector<1x16xf32>
    %c0_18 = arith.constant 0 : index
    %c0_19 = arith.constant 0 : index
    %26 = vector.load %arg6[%c0_18, %c0_19] : memref<16x16xf32, #tpu.memory_space<vmem>>, vector<16x16xf32>
    %cst_20 = arith.constant dense<0.000000e+00> : vector<1x16xf32>
    %27 = tpu.matmul %23, %26, %cst_20 {dimension_numbers = #tpu.dot_dimension_numbers<[1], [0], [0], [1], [0, 0, 1, 1], [], []>} : vector<1x16xf32>, vector<16x16xf32>, vector<1x16xf32> -> vector<1x16xf32>
    %28 = arith.addf %25, %27 : vector<1x16xf32>
    %cst_21 = arith.constant 0.000000e+00 : f32
    %29 = vector.broadcast %cst_21 : f32 to vector<1x16xf32>
    %30 = arith.maximumf %28, %29 : vector<1x16xf32>
    %c0_22 = arith.constant 0 : index
    %c0_23 = arith.constant 0 : index
    %31 = vector.load %arg7[%c0_22, %c0_23] : memref<16x16xf32, #tpu.memory_space<vmem>>, vector<16x16xf32>
    %cst_24 = arith.constant dense<0.000000e+00> : vector<1x16xf32>
    %32 = tpu.matmul %30, %31, %cst_24 {dimension_numbers = #tpu.dot_dimension_numbers<[1], [0], [0], [1], [0, 0, 1, 1], [], []>} : vector<1x16xf32>, vector<16x16xf32>, vector<1x16xf32> -> vector<1x16xf32>
    %33 = arith.negf %32 : vector<1x16xf32>
    %34 = math.exp %33 : vector<1x16xf32>
    %cst_25 = arith.constant 1.000000e+00 : f32
    %35 = vector.broadcast %cst_25 : f32 to vector<1x16xf32>
    %36 = arith.addf %35, %34 : vector<1x16xf32>
    %37 = arith.divf %35, %36 : vector<1x16xf32>
    %38 = arith.mulf %21, %37 : vector<1x16xf32>
    %c0_26 = arith.constant 0 : index
    %c0_27 = arith.constant 0 : index
    %39 = vector.load %arg8[%c0_26, %c0_27] : memref<16x16xf32, #tpu.memory_space<vmem>>, vector<16x16xf32>
    %c0_28 = arith.constant 0 : index
    %c0_29 = arith.constant 0 : index
    %c0_30 = arith.constant 0 : index
    %40 = vector.load %arg1[%c0_28, %c0_29, %c0_30] : memref<1x16x256xf32, #tpu.memory_space<vmem>>, vector<1x16x256xf32>
    %41 = vector.shape_cast %40 : vector<1x16x256xf32> to vector<16x256xf32>
    %42 = vector.shape_cast %38 : vector<1x16xf32> to vector<16xf32>
    %43 = vector.shape_cast %42 : vector<16xf32> to vector<16x1xf32>
    %44 = vector.broadcast %43 : vector<16x1xf32> to vector<16x256xf32>
    %45 = arith.mulf %41, %44 : vector<16x256xf32>
    %cst_31 = arith.constant dense<0.000000e+00> : vector<16x256xf32>
    %46 = tpu.matmul %39, %45, %cst_31 {dimension_numbers = #tpu.dot_dimension_numbers<[1], [0], [0], [1], [0, 0, 1, 1], [], []>} : vector<16x16xf32>, vector<16x256xf32>, vector<16x256xf32> -> vector<16x256xf32>
    %47 = arith.addf %46, %41 : vector<16x256xf32>
    %c0_32 = arith.constant 0 : index
    %c0_33 = arith.constant 0 : index
    %c0_34 = arith.constant 0 : index
    %48 = vector.load %arg9[%c0_32, %c0_33, %c0_34] : memref<1x16x256xf32, #tpu.memory_space<vmem>>, vector<1x16x256xf32>
    %49 = vector.shape_cast %48 : vector<1x16x256xf32> to vector<16x256xf32>
    %50 = vector.shape_cast %47 : vector<16x256xf32> to vector<1x16x256xf32>
    tpu.vector_store %arg9[%c0_32, %c0_33, %c0_34], %50 {strides = array<i32>} : memref<1x16x256xf32, #tpu.memory_space<vmem>>, vector<1x16x256xf32>,
    return
  }
  func.func @transform_0(%arg0: i32) -> (i32, i32, i32) {
    %c0_i32 = arith.constant 0 : i32
    %c0_i32_0 = arith.constant 0 : i32
    %c0_i32_1 = arith.constant 0 : i32
    return %arg0, %c0_i32, %c0_i32_0 : i32, i32, i32
  }
  func.func @transform_1(%arg0: i32) -> (i32, i32) {
    %c0_i32 = arith.constant 0 : i32
    %c0_i32_0 = arith.constant 0 : i32
    %c0_i32_1 = arith.constant 0 : i32
    return %c0_i32, %c0_i32_0 : i32, i32
  }
  func.func @transform_2(%arg0: i32) -> (i32, i32) {
    %c0_i32 = arith.constant 0 : i32
    %c0_i32_0 = arith.constant 0 : i32
    %c0_i32_1 = arith.constant 0 : i32
    return %c0_i32, %c0_i32_0 : i32, i32
  }
  func.func @transform_3(%arg0: i32) -> (i32, i32) {
    %c0_i32 = arith.constant 0 : i32
    %c0_i32_0 = arith.constant 0 : i32
    %c0_i32_1 = arith.constant 0 : i32
    return %c0_i32, %c0_i32_0 : i32, i32
  }
  func.func @transform_4(%arg0: i32) -> (i32, i32) {
    %c0_i32 = arith.constant 0 : i32
    %c0_i32_0 = arith.constant 0 : i32
    %c0_i32_1 = arith.constant 0 : i32
    return %c0_i32, %c0_i32_0 : i32, i32
  }
  func.func @transform_5(%arg0: i32) -> (i32, i32) {
    %c0_i32 = arith.constant 0 : i32
    %c0_i32_0 = arith.constant 0 : i32
    %c0_i32_1 = arith.constant 0 : i32
    return %c0_i32, %c0_i32_0 : i32, i32
  }
  func.func @transform_6(%arg0: i32) -> (i32, i32) {
    %c0_i32 = arith.constant 0 : i32
    %c0_i32_0 = arith.constant 0 : i32
    %c0_i32_1 = arith.constant 0 : i32
    return %c0_i32, %c0_i32_0 : i32, i32
  }
  func.func @transform_7(%arg0: i32) -> (i32, i32) {
    %c0_i32 = arith.constant 0 : i32
    %c0_i32_0 = arith.constant 0 : i32
    %c0_i32_1 = arith.constant 0 : i32
    return %c0_i32, %c0_i32_0 : i32, i32
  }
  func.func @transform_8(%arg0: i32) -> (i32, i32, i32) {
    %c0_i32 = arith.constant 0 : i32
    %c0_i32_0 = arith.constant 0 : i32
    %c0_i32_1 = arith.constant 0 : i32
    return %arg0, %c0_i32, %c0_i32_0 : i32, i32, i32
  }
}

</mosaic_0001>

<bundles_post_ra>
// kernel: tpu_custom_call.1
= control target key start
LH: loop header
LB: loop body
LE: loop exit
PB: predicated region body
PF: predicated region fallthrough
CT: control target
= control target key end

     0   :  { %s1744_s0 = inlined_call_operand.hbm [shape: f32[2,16,256], index: 0, kind: input, shape index: {}]   ;;  %s1745_s1 = inlined_call_operand.vmem [shape: f32[16,2], index: 1, kind: input, shape index: {}]   ;;  %s1746_s2 = inlined_call_operand.vmem [shape: f32[16,2], index: 2, kind: input, shape index: {}]   ;;  %s1747_s3 = inlined_call_operand.hbm [shape: f32[2,16], index: 3, kind: input, shape index: {}]   ;;  %s1748_s4 = inlined_call_operand.vmem [shape: f32[16,16], index: 4, kind: input, shape index: {}]   ;;  %s1749_s5 = inlined_call_operand.vmem [shape: f32[16,16], index: 5, kind: input, shape index: {}]   ;;  %s1750_s6 = inlined_call_operand.hbm [shape: f32[16,16], index: 6, kind: input, shape index: {}]   ;;  %s1751_s7 = inlined_call_operand.vmem [shape: f32[16,16], index: 7, kind: input, shape index: {}]   ;;  %s1752_s8 = inlined_call_operand.hbm [shape: f32[2,16,256], index: 8, kind: output, shape index: {}]  }
   0x1   :  { %1761 = sst [smem:[#allocation16_spill]] %s1747_s3 }
   0x2   :  { %13 = vsyncpa [#allocation3], 0 }
   0x3   :  { %15 = vsyncpa [#allocation3 + $0x1], 0 }
   0x4   :  { %16 = vsyncpa [#allocation6], 0 }
   0x5   :  { %17 = vsyncpa [#allocation4], 0 }
   0x6   :  { %19 = vsyncpa [#allocation4 + $0x1], 0  ;;  %s1455_s27 = smov 0   ;;  %s1457_s28 = smov 0  }
   0x7   :  { %s1459_s29 = smov 0   ;;  %s1461_s30 = smov 0  }
   0x8 LB: > { %1762 = sst [smem:[#allocation12_spill]] %s1392_s29  ;;  %s1476_s9 = sadd.s32 4294967295, %s1396_s30   ;;  %s1396_s30 = sphi %s1461_s30, %s1783_s30   ;;  %s1392_s29 = sphi %s1459_s29, %s1785_s29   ;;  %s1388_s28 = sphi %s1457_s28, %s1787_s28   ;;  %s1384_s27 = sphi %s1455_s27, %s1786_s27  }
   0x9   : > { %s1077_s10 = sadd.s32 4294967294, %s1396_s30   ;;  %s1480_s11 = sadd.s32 1, %s1396_s30  }
   0xa   : > { %1763 = sst [smem:[#allocation13_spill]] %s1480_s11  ;;  %s32_s12 = sadd.s32 1, %s1392_s29 }
   0xb   : > { %s29_s13 = ssub.s32 %s1396_s30, %s1480_s11  ;;  %p39_p0 = scmp.ne.s32.totalorder %s1392_s29, %s1388_s28 }
   0xc   : > { %p30_p1 = scmp.eq.s32.totalorder %s29_s13, 0  ;;  %p40_p2 = scmp.eq.s32.totalorder %s1396_s30, 0 }
   0xd   : > { %p45_p3 = scmp.ne.s32.totalorder %s1388_s28, %s1384_s27  ;;  %p1753_p4 = scmp.eq.s32.totalorder %s1476_s9, 0 }
   0xe   : > { %s1492_s14 = scalar_select %p30_p1, %s1392_s29, %s32_s12  }
   0xf   : > { %p1494_p5 = por %p40_p2, %p39_p0  ;;  %p1500_p6 = por %p1753_p4, %p45_p3 }
  0x10   : > { %1764 = sst [smem:[#allocation14_spill]] %s1492_s14  ;;  %p216_p7 = scmp.eq.s32.totalorder %s1476_s9, 1 }
  0x11   : > { %s1766_s16 = scalar_select %p1500_p6, 1, 0 }
  0x12   : > { %p222_p8 = scmp.eq.s32.totalorder %s1077_s10, 1  ;;  %p1078_p9 = scmp.ge.s32.totalorder %s1396_s30, 1 }
  0x13   : > { %p229_p10 = scmp.lt.s32.totalorder %s1396_s30, 3  ;;  %p1507_p11 = por %p216_p7, %p39_p0 }
  0x14   : > { %p1511_p12 = por %p222_p8, %p45_p3  ;;  %s1398_s20 = smov [#allocation5]  }
  0x15   : > { %s1767_s17 = scalar_select %p1507_p11, 1, 0 }
  0x16   : > { %s1768_s18 = scalar_select %p1511_p12, 1, 0 }
  0x17   : > { %p1515_p13 = pnand %p1078_p9, %p229_p10  ;;  %s248_s21 = sshll.u32 %s1398_s20, 4  ;;  %s249_s21 = int_to_ptr.vmem [resolvable:$true] %s248_s21 }
  0x18   : > { %1769 = sst [smem:[#allocation15_spill]] %s1768_s18  ;;  %p1194_p4 = scmp.lt.s32.totalorder %s1396_s30, 2 }
  0x19   : > { %s1770_s19 = scalar_select %p1515_p13, 1, 0 }
  0x1a   : > { %p1177_p2 = pneg %p1515_p13  ;;  %p1771_p0 = scmp.eq.s32.totalorder %s1476_s9, 0 }
  0x1b   : > { %p1531_p3 = pnand %p1194_p4, %p1494_p5  ;;  %s1399_s24 = smov [#allocation7]  }
  0x1c   : > { %p1525_p7 = pnand %p1177_p2, %p1771_p0  ;;  %s264_s25 = sshll.u32 %s1399_s24, 4  ;;  %s265_s25 = int_to_ptr.vmem [resolvable:$true] %s264_s25 }
  0x1d   : > { %s1259_s26 = scalar_lea.vmem %s249_s21, 32  ;;  %p1267_p0 = scmp.lt.s32.totalorder %s249_s21, %s249_s21 }
  0x1e   : > { %p1250_p8 = pneg %p1525_p7  ;;  %p1260_p9 = scmp.ne.s32.totalorder %s249_s21, %s1259_s26 }
  0x1f   : > { %p1268_p1 = scmp.lt.s32.totalorder %s1259_s26, %s1259_s26 }
  0x20   : > { %p1262_p10 = pnand %p1260_p9, %p1250_p8 }
  0x21   : > { %p1269_p12 = por %p1268_p1, %p1267_p0 }
  0x22   : > { %p1263_p2 = pneg %p1262_p10 }
  0x24   : > { %p1270_p11 = pnand %p1269_p12, %p1263_p2 }
  0x26   : > { %1273 = shalt.err (!%p1270_p11)
}
  0x27   : > { %s1774_s3 = sld [smem:[#allocation16_spill]]  ;;  %s281_s13 = sand.u32 1, %s1392_s29  }
  0x28   : > { %s1285_s15 = scalar_lea.vmem %s265_s25, 256  ;;  %p1293_p10 = scmp.lt.s32.totalorder %s265_s25, %s265_s25 }
  0x29   : > { %p1286_p4 = scmp.ne.s32.totalorder %s265_s25, %s1285_s15  ;;  %p1294_p6 = scmp.lt.s32.totalorder %s1285_s15, %s1285_s15 }
  0x2b   : > { %p1288_p5 = pnand %p1286_p4, %p1250_p8  ;;  %p1295_p1 = por %p1294_p6, %p1293_p10 }
  0x2d   : > { %1180 = dma.hbm_to_vmem [thread:$0]  (!%p1525_p7), %s1774_s3, 32, %s249_s21, [#allocation6]  }
  0x2e   : > { %p1289_p9 = pneg %p1288_p5 }
  0x30   : > { %p1296_p12 = pnand %p1295_p1, %p1289_p9 }
  0x32   : > { %1299 = shalt.err (!%p1296_p12)
}
  0x33   : > { %s1400_s20 = smov 128   ;;  %s1401_s24 = smov 8  }
  0x34   : > { %1183 = dma.hbm_to_vmem [thread:$0]  (!%p1525_p7), %s1750_s6, 256, %s265_s25, [#allocation6], %s1400_s20, %s1400_s20, %s1401_s24  }
  0x35   : > { %s1082_s10 = sshll.u32 %s281_s13, 5  ;;  %s1106_s12 = sshll.u32 %s1396_s30, 9 }
  0x36   : > { %s1558_s29 = scalar_lea.hbm %s1744_s0, %s1106_s12  ;;  %s285_s15 = scalar_lea.vmem [#allocation2], %s1082_s10 }
  0x37   : > { %s292_s11 = sshll.u32 %s285_s15, 4  ;;  %s1562_s18 = scalar_lea.sflag [#allocation3], %s281_s13  ;;  %s1560_s11 = int_to_ptr.vmem [resolvable:$true] %s292_s11 }
  0x38   : > { %s1300_s22 = scalar_lea.hbm %s1558_s29, 512  ;;  %p1302_p11 = pneg %p1531_p3 }
  0x39   : > { %p1301_p6 = scmp.ne.s32.totalorder %s1558_s29, %s1300_s22  ;;  %s1305_s3 = scalar_lea.hbm %s1744_s0, 1024 }
  0x3a   : > { %p1306_p2 = scmp.lt.s32.totalorder %s1558_s29, %s1744_s0  ;;  %p1307_p0 = scmp.lt.s32.totalorder %s1305_s3, %s1300_s22 }
  0x3b   : > { %p1303_p7 = pnand %p1302_p11, %p1301_p6 }
  0x3c   : > { %p1308_p4 = por %p1307_p0, %p1306_p2 }
  0x3d   : > { %p1304_p8 = pneg %p1303_p7 }
  0x3f   : > { %p1309_p5 = pnand %p1308_p4, %p1304_p8 }
  0x41   : > { %1312 = shalt.err (!%p1309_p5)
}
  0x42   : > { %s1313_s13 = scalar_lea.vmem %s1560_s11, 512  ;;  %s1402_s26 = smov [#allocation2]  }
  0x43   : > { %p1314_p9 = scmp.ne.s32.totalorder %s1560_s11, %s1313_s13  ;;  %s1318_s21 = sshll.u32 %s1402_s26, 4  ;;  %s1319_s21 = int_to_ptr.vmem [resolvable:$false] %s1318_s21 }
  0x44   : > { %s1320_s10 = scalar_lea.vmem %s1319_s21, 1024  ;;  %p1321_p12 = scmp.lt.s32.totalorder %s1560_s11, %s1319_s21 }
  0x45   : > { %p1316_p10 = pnand %p1314_p9, %p1302_p11  ;;  %p1322_p6 = scmp.lt.s32.totalorder %s1320_s10, %s1313_s13 }
  0x47   : > { %p1317_p1 = pneg %p1316_p10  ;;  %p1323_p7 = por %p1322_p6, %p1321_p12 }
  0x49   : > { %p1324_p13 = pnand %p1323_p7, %p1317_p1 }
  0x4b   : > { %1327 = shalt.err (!%p1324_p13)
}
  0x4c   : > { %s1403_s12 = smov 256   ;;  %s1404_s15 = smov 16  }
  0x4d   : > { %1187 = dma.hbm_to_vmem [thread:$0]  (!%p1531_p3), %s1558_s29, 512, %s1560_s11, %s1562_s18, %s1403_s12, %s1403_s12, %s1404_s15  }
  0x4e   : > { %p1775_p11 = scmp.ne.s32.totalorder %s1770_s19, 0 }
  0x4f   : > { %s1586_s22 = sand.u32 (!%p1775_p11), 1, %s1388_s28   ;;  %p1776_p13 = scmp.ne.s32.totalorder (!%p1775_p11), %s1766_s16, 0 }
  0x50   : > { %304 = sbr.rel (%p1775_p11) target bundleno = 1427 (0x593), region = 52  ;;  %s1086_s25 = sshll.u32 (!%p1775_p11), %s1586_s22, 5 }
  0x51   : > { %s307_s20 = scalar_lea.sflag (!%p1775_p11), [#allocation3], %s1586_s22  ;;  %s310_s3 = scalar_lea.vmem (!%p1775_p11), [#allocation2], %s1086_s25 }
  0x55   : > { %1371 = dma.done.wait (%p1776_p13), %s307_s20, 512  }
  0x56   : > { %1373 = vsyncadd (%p1776_p13), %s307_s20, 4294966784  ;;  %p1777_p3 = scmp.eq.s32.totalorder %s1476_s9, 0 }
  0x58   : > { %1375 = dma.done.wait (%p1777_p3), [#allocation6], 288   ;;  %p1778_p8 = pmov %p1777_p3 }
  0x59   : > { %v1600_v0 = vld [vmem:[%s310_s3] sm:$0xff]  ;;  %v1602_v1 = vld [vmem:[%s310_s3 + $0x8] sm:$0xff]  ;;  %v1604_v2 = vld [vmem:[%s310_s3 + $0x10] sm:$0xff]  ;;  %v1405_v8 = vmov 0.0   ;;  %vm1406_vm0 = vmmov 0   ;;  %v375_v11 = vlaneseq  ;;  %vm386_vm1 = vcmask 130112  }
  0x5a   : > { %1377 = vsyncadd (%p1778_p8), [#allocation6], 4294967008  ;;  %v361_v3 = vmax.f32 %v1600_v0, %v1602_v1  ;;  %v355_v4 = vadd.f32 %v1602_v1, %v1600_v0  ;;  %v1610_v5 = vld [vmem:[%s310_s3 + $0x18] sm:$0xff]  ;;  %1125 = vmatprep.subr.mxu1 %v1405_v8  ;;  %v372_v9 = vld [vmem:[%s1746_s2 + $0x8] sm:$0xff]  ;;  %1139 = vmatprep.subr.mxu0 %v1405_v8  ;;  %vm388_vm2 = vcmask 130048   ;;  %vm550_vm3 = vcmask 1041408  }
  0x5b   : > { %v364_v6 = vmax.f32 %v1604_v2, %v1610_v5  ;;  %v358_v7 = vadd.f32 %v1610_v5, %v1604_v2  ;;  %1126 = vmatpush3.msra.mxu1 %v372_v9  ;;  %v371_v10 = vld [vmem:[%s1746_s2] sm:$0xff]  ;;  %1129 = vmatprep.mubr.msk.f32.mxu1 %vm1406_vm0, %v1405_v8  ;;  %v376_v12 = vand.u32 127, %v375_v11  ;;  %v1630_v13 = vshrl.u32 %v375_v11, 7  ;;  %v370_v25 = vld [vmem:[%s1745_s1 + $0x8] sm:$0xff]  ;;  %s350_s19 = scalar_lea.vmem [#allocation8], %s1086_s25  ;;  %s1107_s14 = sshll.u32 %s1476_s9, 9 }
  0x5c   : > { %362 = vmax.xlane.f32.xlu0 %v361_v3  ;;  %356 = vadd.xlane.f32.xlu1 %v355_v4  ;;  %v369_v28 = vld [vmem:[%s1745_s1] sm:$0xff]  ;;  %vm546_vm4 = vcmask 15360   ;;  %v637_v38 = vld [vmem:[%s1749_s5 + $0x8] sm:$0xff]  ;;  %s985_s23 = sshll.u32 %s350_s19, 4  ;;  %s1700_s25 = scalar_lea.hbm %s1752_s8, %s1107_s14  ;;  %s1694_s23 = int_to_ptr.vmem [resolvable:$true] %s985_s23 }
  0x5d   : > { %1127 = vmatprep.subr.mxu1 %v1405_v8  ;;  %1141 = vmatprep.mubr.msk.f32.mxu0 %vm1406_vm0, %v1405_v8  ;;  %v381_v14 = vadd.s32 4294967288, %v376_v12  ;;  %v379_v17 = vsub.s32 %v376_v12, %v1630_v13  ;;  %v545_v31 = vld [vmem:[#allocation5] sm:$0x3]  ;;  %v635_v39 = vld [vmem:[%s1748_s4 + $0x8] sm:$0xff]  ;;  %v871_v63 = vsub.s32 0, %v1630_v13  ;;  %s972_s9 = scalar_lea.sflag [#allocation4], %s1586_s22 }
  0x5e   : > { %1128 = vmatpush3.msra.mxu1 %v371_v10  ;;  %1140 = vmatpush3.msk.msra.mxu0 %vm550_vm3, %v545_v31  ;;  %v636_v40 = vld [vmem:[%s1749_s5] sm:$0xff]  ;;  %v786_v50 = vld [vmem:[#allocation7 + $0x8] sm:$0xff]  ;;  %s1328_s26 = scalar_lea.vmem %s1694_s23, 512  ;;  %p1779_p0 = scmp.ne.s32.totalorder %s1767_s17, 0 }
  0x5f   : > { %1132 = vmatprep.subr.mxu1 %v1405_v8  ;;  %v384_v18 = vsub.s32 %v381_v14, %v1630_v13  ;;  %1151 = vmatprep.subr.mxu0 %v1405_v8  ;;  %v634_v41 = vld [vmem:[%s1748_s4] sm:$0xff]  ;;  %p1329_p2 = scmp.ne.s32.totalorder %s1694_s23, %s1328_s26  ;;  %s1407_s21 = smov [#allocation8]  }
  0x60   : > { %365 = vmax.xlane.f32.xlu0 %v364_v6  ;;  %359 = vadd.xlane.f32.xlu1 %v358_v7  ;;  %v785_v51 = vld [vmem:[#allocation7] sm:$0xff]  ;;  %s1332_s10 = sshll.u32 %s1407_s21, 4  ;;  %s1333_s10 = int_to_ptr.vmem [resolvable:$false] %s1332_s10 }
  0x61   : > { %v867_v13 = vld [vmem:[%s1751_s7] sm:$0xff]  ;;  %p1330_p4 = pnand %p1329_p2, %p1779_p0  ;;  %s1334_s12 = scalar_lea.vmem %s1333_s10, 1024 }
  0x62   : > { %p1335_p9 = scmp.lt.s32.totalorder %s1694_s23, %s1333_s10  ;;  %p1336_p10 = scmp.lt.s32.totalorder %s1334_s12, %s1328_s26 }
  0x63   : > { %p1331_p5 = pneg %p1330_p4 }
  0x64   : > { %p1337_p1 = por %p1336_p10, %p1335_p9 }
  0x66   : > { %p1338_p12 = pnand %p1337_p1, %p1331_p5 }
  0xe5   : > { %v363_v15 = vpop.xlane.xlu0 %362  ;;  %v357_v16 = vpop.xlane.xlu1 %356 }
  0xe6   : > { %v380_v21 = vrot.slane %v363_v15, %v379_v17  ;;  %v367_v22 = vmul.f32 0.00390625, %v357_v16  ;;  %v868_v15 = vld [vmem:[%s1751_s7 + $0x8] sm:$0xff] }
  0xe8   : > { %v466_v29 = vrot.slane %v367_v22, %v379_v17 }
  0xe9   : > { %v366_v19 = vpop.xlane.xlu0 %365  ;;  %v360_v20 = vpop.xlane.xlu1 %359 }
  0xea   : > { %v385_v23 = vrot.slane %v366_v19, %v384_v18  ;;  %v368_v24 = vmul.f32 0.00390625, %v360_v20 }
  0xec   : > { %v470_v26 = vrot.slane %v368_v24, %v384_v18  ;;  %v387_v27 = vsel %vm386_vm1, %v385_v23, %v380_v21 }
  0xed   : > { %1130 = vmatmul.mubr.msk.f32.vlgmr.msra.gmra.mxu1 %vm388_vm2, %v387_v27 }
  0xee   : > { %1133 = vmatpush3.msra.mxu1 %v370_v25  ;;  %1136 = vmatprep.mubr.msk.f32.mxu1 %vm1406_vm0, %v1405_v8  ;;  %v471_v30 = vsel %vm386_vm1, %v470_v26, %v466_v29 }
  0xef   : > { %1134 = vmatprep.subr.mxu1 %v1405_v8 }
  0xf0   : > { %1135 = vmatpush3.msra.mxu1 %v369_v28 }
  0xf1   : > { %1137 = vmatmul.mubr.msk.f32.vlgmr.msra.gmra.mxu1 %vm388_vm2, %v471_v30  ;;  %1144 = vmatprep.subr.mxu1 %v1405_v8 }
  0xf2   : > { %1148 = vmatprep.mubr.msk.f32.mxu1 %vm1406_vm0, %v1405_v8  ;;  %1145 = vmatpush3.msra.mxu1 %v637_v38 }
  0xf3   : > { %1146 = vmatprep.subr.mxu1 %v1405_v8 }
  0xf4   : > { %1147 = vmatpush3.msra.mxu1 %v636_v40 }
  0xf5   : > { %1158 = vmatprep.subr.mxu1 %v1405_v8 }
 0x1ad   : > { %v457_v32 = vpop.f32.mrf.mxu1 }
 0x1af   : > { %v1131_v33 = vpop.f32.mrf.mxu1 }
 0x1b1   : > { %v540_v34 = vpop.f32.mrf.mxu1 }
 0x1b2   : > { %v541_v35 = vadd.f32 %v540_v34, %v457_v32 }
 0x1b3   : > { %v1138_v36 = vpop.f32.mrf.mxu1 }
 0x1b4   : > { %v544_v37 = vmax.f32 %v541_v35, 0.0 }
 0x1b6   : > { %1142 = vmatmul.mubr.msk.f32.vlgmr.msra.gmra.mxu0 %vm546_vm4, %v544_v37 }
 0x1b7   : > { %1155 = vmatprep.mubr.msk.f32.mxu0 %vm1406_vm0, %v1405_v8  ;;  %1152 = vmatpush3.msra.mxu0 %v635_v39 }
 0x1b8   : > { %1153 = vmatprep.subr.mxu0 %v1405_v8 }
 0x1b9   : > { %1154 = vmatpush3.msra.mxu0 %v634_v41 }
 0x276   : > { %v620_v42 = vpop.f32.mrf.mxu0 }
 0x277   : > { %v1094_v43 = vmul.f32 -1.442695, %v620_v42 }
 0x278   : > { %v1143_v44 = vpop.f32.mrf.mxu0 }
 0x279   : > { %1240 = vpow2.f32 %v1094_v43 }
 0x286   : > { %v1241_v45 = vpop.eup %1240 }
 0x287   : > { %v627_v46 = vadd.f32 1.0, %v1241_v45 }
 0x289   : > { %1242 = vrcp.f32 %v627_v46 }
 0x296   : > { %v1243_v47 = vpop.eup %1242 }
 0x297   : > { %v633_v48 = vmul.f32 %v1243_v47, %v387_v27  ;;  %v631_v49 = vmul.f32 %v1243_v47, %v471_v30 }
 0x299   : > { %1149 = vmatmul.mubr.msk.f32.vlgmr.msra.gmra.mxu1 %vm388_vm2, %v633_v48  ;;  %1156 = vmatmul.mubr.msk.f32.vlgmr.msra.gmra.mxu0 %vm388_vm2, %v631_v49 }
 0x29a   : > { %1162 = vmatprep.mubr.msk.f32.mxu1 %vm1406_vm0, %v1405_v8  ;;  %954 = vmatprep.mubr.f32.mxu0 %v1405_v8 }
 0x29b   : > { %1159 = vmatpush3.msra.mxu1 %v786_v50 }
 0x29c   : > { %1160 = vmatprep.subr.mxu1 %v1405_v8 }
 0x29d   : > { %1161 = vmatpush3.msra.mxu1 %v785_v51 }
 0x359   : > { %v707_v52 = vpop.f32.mrf.mxu1  ;;  %v780_v53 = vpop.f32.mrf.mxu0 }
 0x35a   : > { %v781_v54 = vadd.f32 %v780_v53, %v707_v52 }
 0x35b   : > { %v1150_v55 = vpop.f32.mrf.mxu1  ;;  %v1157_v56 = vpop.f32.mrf.mxu0 }
 0x35c   : > { %v784_v57 = vmax.f32 %v781_v54, 0.0 }
 0x35e   : > { %1163 = vmatmul.mubr.msk.f32.vlgmr.msra.gmra.mxu1 %vm388_vm2, %v784_v57 }
 0x41e   : > { %v856_v58 = vpop.f32.mrf.mxu1 }
 0x41f   : > { %v1098_v59 = vmul.f32 -1.442695, %v856_v58 }
 0x420   : > { %v1164_v60 = vpop.f32.mrf.mxu1 }
 0x421   : > { %1244 = vpow2.f32 %v1098_v59 }
 0x42e   : > { %v1245_v61 = vpop.eup %1244 }
 0x42f   : > { %v863_v62 = vadd.f32 1.0, %v1245_v61 }
 0x431   : > { %1246 = vrcp.f32 %v863_v62 }
 0x43e   : > { %v1247_v3 = vpop.eup %1246 }
 0x43f   : > { %v866_v4 = vmul.f32 %v1247_v3, %v1243_v47 }
 0x441   : > { %v872_v6 = vrot.slane %v866_v4, %v871_v63 }
 0x443   : > { %874 = vbcast.lane.b32.xlu1 %v872_v6, 256  ;;  %878 = vbcast.lane.b32.xlu0 %v872_v6, 264 }
 0x4b5   : > { %v875_v7 = vpop.permute.xlu1 %874  ;;  %v879_v9 = vpop.permute.xlu0 %878 }
 0x4b6   : > { %v882_v10 = vmul.f32 %v879_v9, %v1604_v2  ;;  %v883_v11 = vmul.f32 %v879_v9, %v1610_v5  ;;  %v881_v12 = vmul.f32 %v875_v7, %v1602_v1  ;;  %v880_v14 = vmul.f32 %v875_v7, %v1600_v0 }
 0x4b8   : > { %918 = vmatprep.subr.mxu0 %v883_v11 }
 0x4b9   : > { %919 = vmatpush1.msra.mxu0 %v882_v10 }
 0x4ba   : > { %920 = vmatprep.subr.mxu0 %v881_v12 }
 0x4bb   : > { %921 = vmatpush1.msra.mxu0 %v880_v14 }
 0x4bc   : > { %1099 = vmatmul.mubr.msk.f32.vlgmr.msra.gmra.mxu0 %vm388_vm2, %v867_v13 }
 0x4bd   : > { %960 = vmatprep.mubr.f32.mxu0 %v1405_v8 }
 0x4c0   : > { %1100 = vmatmul.mubr.msk.f32.gmra.mxu0 %vm388_vm2, %v868_v15 }
 0x57c   : > { %v956_v16 = vpop.f32.mrf.mxu0 }
 0x57d   : > { %v957_v17 = vadd.f32 %v956_v16, %v1600_v0 }
 0x57e   : > { %v958_v18 = vpop.f32.mrf.mxu0 }
 0x57f   : > { %967 = vst [vmem:[%s350_s19] sm:$0xff] %v957_v17  ;;  %v959_v19 = vadd.f32 %v958_v18, %v1602_v1 }
 0x580   : > { %v962_v8 = vpop.f32.mrf.mxu0 }
 0x581   : > { %968 = vst [vmem:[%s350_s19 + $0x8] sm:$0xff] %v959_v19  ;;  %v963_v20 = vadd.f32 %v962_v8, %v1604_v2 }
 0x582   : > { %v964_v0 = vpop.f32.mrf.mxu0 }
 0x583   : > { %969 = vst [vmem:[%s350_s19 + $0x10] sm:$0xff] %v963_v20  ;;  %v965_v21 = vadd.f32 %v964_v0, %v1610_v5 }
 0x585   : > { %970 = vst [vmem:[%s350_s19 + $0x18] sm:$0xff] %v965_v21 }
 0x586   : > { %1341 = shalt.err (!%p1338_p12)
}
 0x587   : > { %s1342_s15 = scalar_lea.hbm %s1700_s25, 512  ;;  %s1346_s29 = scalar_lea.hbm %s1752_s8, 1024 }
 0x588   : > { %p1343_p6 = scmp.ne.s32.totalorder %s1700_s25, %s1342_s15  ;;  %p1347_p13 = scmp.lt.s32.totalorder %s1700_s25, %s1752_s8 }
 0x589   : > { %p1348_p3 = scmp.lt.s32.totalorder %s1346_s29, %s1342_s15 }
 0x58a   : > { %p1344_p7 = pnand %p1343_p6, %p1779_p0 }
 0x58b   : > { %p1349_p8 = por %p1348_p3, %p1347_p13 }
 0x58c   : > { %p1345_p11 = pneg %p1344_p7 }
 0x58e   : > { %p1350_p2 = pnand %p1349_p8, %p1345_p11 }
 0x590   : > { %1353 = shalt.err (!%p1350_p2)
}
 0x591   : > { %s1408_s18 = smov 256   ;;  %s1409_s19 = smov 16  }
 0x592   : > { %1175 = dma.vmem_to_hbm [thread:$0]  (%p1779_p0), %s1694_s23, 512, %s1700_s25, %s972_s9, %s1408_s18, %s1408_s18, %s1409_s19  }
 0x593 PF: > { %s1780_s14 = sld [smem:[#allocation15_spill]]  ;;  %s1000_s24 = sand.u32 1, %s1384_s27  }
 0x594   : > { %p1782_p5 = scmp.ge.s32.totalorder %s1396_s30, 2  ;;  %s1001_s13 = scalar_lea.sflag [#allocation4], %s1000_s24 }
 0x599   : > { %p1781_p4 = scmp.ne.s32.totalorder %s1780_s14, 0 }
 0x59b   : > { %p1189_p9 = pnand %p1782_p5, %p1781_p4 }
 0x59d   : > { %p1190_p10 = pneg %p1189_p9 }
 0x59f   : > { %1379 = dma.done.wait (%p1190_p10), %s1001_s13, 512  }
 0x5a0   : > { %1381 = vsyncadd (%p1190_p10), %s1001_s13, 4294966784  ;;  %s1783_s30 = sld [smem:[#allocation13_spill]]  ;;  %s1786_s27 = smov %s1388_s28 }
 0x5a1   : > { %s1784_s26 = sld [smem:[#allocation12_spill]] }
 0x5a2   : > { %s1785_s29 = sld [smem:[#allocation14_spill]] }
 0x5a6   : > { %p22_p1 = scmp.ge.s32.totalorder %s1783_s30, 4  }
 0x5a7   : > { %s1787_s28 = smov %s1784_s26 }
 0x5a8   :  { %24 = sbr.rel (!%p22_p1) target bundleno = 8 (0x8), region = 105 }
 0x5ad   :  { %1006 = vsyncpa [#allocation3], 1 }
 0x5ae   :  { %1008 = vsyncpa [#allocation3 + $0x1], 1 }
 0x5af   :  { %1009 = vsyncpa [#allocation6], 1 }
 0x5b0   :  { %1010 = vsyncpa [#allocation4], 1 }
 0x5b1   :  { %1012 = vsyncpa [#allocation4 + $0x1], 1 }

// kernel: tpu_custom_call.1
= control target key start
LH: loop header
LB: loop body
LE: loop exit
PB: predicated region body
PF: predicated region fallthrough
CT: control target
= control target key end

     0   :  { %s1744_s0 = inlined_call_operand.hbm [shape: f32[2,16,256], index: 0, kind: input, shape index: {}]   ;;  %s1745_s1 = inlined_call_operand.vmem [shape: f32[16,2], index: 1, kind: input, shape index: {}]   ;;  %s1746_s2 = inlined_call_operand.vmem [shape: f32[16,2], index: 2, kind: input, shape index: {}]   ;;  %s1747_s3 = inlined_call_operand.hbm [shape: f32[2,16], index: 3, kind: input, shape index: {}]   ;;  %s1748_s4 = inlined_call_operand.vmem [shape: f32[16,16], index: 4, kind: input, shape index: {}]   ;;  %s1749_s5 = inlined_call_operand.vmem [shape: f32[16,16], index: 5, kind: input, shape index: {}]   ;;  %s1750_s6 = inlined_call_operand.hbm [shape: f32[16,16], index: 6, kind: input, shape index: {}]   ;;  %s1751_s7 = inlined_call_operand.vmem [shape: f32[16,16], index: 7, kind: input, shape index: {}]   ;;  %s1752_s8 = inlined_call_operand.hbm [shape: f32[2,16,256], index: 8, kind: output, shape index: {}]  }
   0x1   :  { %1761 = sst [smem:[#allocation16_spill]] %s1747_s3 }
   0x2   :  { %13 = vsyncpa [#allocation3], 0 }
   0x3   :  { %15 = vsyncpa [#allocation3 + $0x1], 0 }
   0x4   :  { %16 = vsyncpa [#allocation6], 0 }
   0x5   :  { %17 = vsyncpa [#allocation4], 0 }
   0x6   :  { %19 = vsyncpa [#allocation4 + $0x1], 0  ;;  %s1455_s27 = smov 0   ;;  %s1457_s28 = smov 0  }
   0x7   :  { %s1459_s29 = smov 0   ;;  %s1461_s30 = smov 0  }
   0x8 LB: > { %1762 = sst [smem:[#allocation12_spill]] %s1392_s29  ;;  %s1476_s9 = sadd.s32 4294967295, %s1396_s30   ;;  %s1396_s30 = sphi %s1461_s30, %s1783_s30   ;;  %s1392_s29 = sphi %s1459_s29, %s1785_s29   ;;  %s1388_s28 = sphi %s1457_s28, %s1787_s28   ;;  %s1384_s27 = sphi %s1455_s27, %s1786_s27  }
   0x9   : > { %s1077_s10 = sadd.s32 4294967294, %s1396_s30   ;;  %s1480_s11 = sadd.s32 1, %s1396_s30  }
   0xa   : > { %1763 = sst [smem:[#allocation13_spill]] %s1480_s11  ;;  %s32_s12 = sadd.s32 1, %s1392_s29 }
   0xb   : > { %s29_s13 = ssub.s32 %s1396_s30, %s1480_s11  ;;  %p39_p0 = scmp.ne.s32.totalorder %s1392_s29, %s1388_s28 }
   0xc   : > { %p30_p1 = scmp.eq.s32.totalorder %s29_s13, 0  ;;  %p40_p2 = scmp.eq.s32.totalorder %s1396_s30, 0 }
   0xd   : > { %p45_p3 = scmp.ne.s32.totalorder %s1388_s28, %s1384_s27  ;;  %p1753_p4 = scmp.eq.s32.totalorder %s1476_s9, 0 }
   0xe   : > { %s1492_s14 = scalar_select %p30_p1, %s1392_s29, %s32_s12  }
   0xf   : > { %p1494_p5 = por %p40_p2, %p39_p0  ;;  %p1500_p6 = por %p1753_p4, %p45_p3 }
  0x10   : > { %1764 = sst [smem:[#allocation14_spill]] %s1492_s14  ;;  %p216_p7 = scmp.eq.s32.totalorder %s1476_s9, 1 }
  0x11   : > { %s1766_s16 = scalar_select %p1500_p6, 1, 0 }
  0x12   : > { %p222_p8 = scmp.eq.s32.totalorder %s1077_s10, 1  ;;  %p1078_p9 = scmp.ge.s32.totalorder %s1396_s30, 1 }
  0x13   : > { %p229_p10 = scmp.lt.s32.totalorder %s1396_s30, 3  ;;  %p1507_p11 = por %p216_p7, %p39_p0 }
  0x14   : > { %p1511_p12 = por %p222_p8, %p45_p3  ;;  %s1398_s20 = smov [#allocation5]  }
  0x15   : > { %s1767_s17 = scalar_select %p1507_p11, 1, 0 }
  0x16   : > { %s1768_s18 = scalar_select %p1511_p12, 1, 0 }
  0x17   : > { %p1515_p13 = pnand %p1078_p9, %p229_p10  ;;  %s248_s21 = sshll.u32 %s1398_s20, 4  ;;  %s249_s21 = int_to_ptr.vmem [resolvable:$true] %s248_s21 }
  0x18   : > { %1769 = sst [smem:[#allocation15_spill]] %s1768_s18  ;;  %p1194_p4 = scmp.lt.s32.totalorder %s1396_s30, 2 }
  0x19   : > { %s1770_s19 = scalar_select %p1515_p13, 1, 0 }
  0x1a   : > { %p1177_p2 = pneg %p1515_p13  ;;  %p1771_p0 = scmp.eq.s32.totalorder %s1476_s9, 0 }
  0x1b   : > { %p1531_p3 = pnand %p1194_p4, %p1494_p5  ;;  %s1399_s24 = smov [#allocation7]  }
  0x1c   : > { %p1525_p7 = pnand %p1177_p2, %p1771_p0  ;;  %s264_s25 = sshll.u32 %s1399_s24, 4  ;;  %s265_s25 = int_to_ptr.vmem [resolvable:$true] %s264_s25 }
  0x1d   : > { %s1259_s26 = scalar_lea.vmem %s249_s21, 32  ;;  %p1267_p0 = scmp.lt.s32.totalorder %s249_s21, %s249_s21 }
  0x1e   : > { %p1250_p8 = pneg %p1525_p7  ;;  %p1260_p9 = scmp.ne.s32.totalorder %s249_s21, %s1259_s26 }
  0x1f   : > { %p1268_p1 = scmp.lt.s32.totalorder %s1259_s26, %s1259_s26 }
  0x20   : > { %p1262_p10 = pnand %p1260_p9, %p1250_p8 }
  0x21   : > { %p1269_p12 = por %p1268_p1, %p1267_p0 }
  0x22   : > { %p1263_p2 = pneg %p1262_p10 }
  0x24   : > { %p1270_p11 = pnand %p1269_p12, %p1263_p2 }
  0x26   : > { %1273 = shalt.err (!%p1270_p11)
}
  0x27   : > { %s1774_s3 = sld [smem:[#allocation16_spill]]  ;;  %s281_s13 = sand.u32 1, %s1392_s29  }
  0x28   : > { %s1285_s15 = scalar_lea.vmem %s265_s25, 256  ;;  %p1293_p10 = scmp.lt.s32.totalorder %s265_s25, %s265_s25 }
  0x29   : > { %p1286_p4 = scmp.ne.s32.totalorder %s265_s25, %s1285_s15  ;;  %p1294_p6 = scmp.lt.s32.totalorder %s1285_s15, %s1285_s15 }
  0x2b   : > { %p1288_p5 = pnand %p1286_p4, %p1250_p8  ;;  %p1295_p1 = por %p1294_p6, %p1293_p10 }
  0x2d   : > { %1180 = dma.hbm_to_vmem [thread:$0]  (!%p1525_p7), %s1774_s3, 32, %s249_s21, [#allocation6]  }
  0x2e   : > { %p1289_p9 = pneg %p1288_p5 }
  0x30   : > { %p1296_p12 = pnand %p1295_p1, %p1289_p9 }
  0x32   : > { %1299 = shalt.err (!%p1296_p12)
}
  0x33   : > { %s1400_s20 = smov 128   ;;  %s1401_s24 = smov 8  }
  0x34   : > { %1183 = dma.hbm_to_vmem [thread:$0]  (!%p1525_p7), %s1750_s6, 256, %s265_s25, [#allocation6], %s1400_s20, %s1400_s20, %s1401_s24  }
  0x35   : > { %s1082_s10 = sshll.u32 %s281_s13, 5  ;;  %s1106_s12 = sshll.u32 %s1396_s30, 9 }
  0x36   : > { %s1558_s29 = scalar_lea.hbm %s1744_s0, %s1106_s12  ;;  %s285_s15 = scalar_lea.vmem [#allocation2], %s1082_s10 }
  0x37   : > { %s292_s11 = sshll.u32 %s285_s15, 4  ;;  %s1562_s18 = scalar_lea.sflag [#allocation3], %s281_s13  ;;  %s1560_s11 = int_to_ptr.vmem [resolvable:$true] %s292_s11 }
  0x38   : > { %s1300_s22 = scalar_lea.hbm %s1558_s29, 512  ;;  %p1302_p11 = pneg %p1531_p3 }
  0x39   : > { %p1301_p6 = scmp.ne.s32.totalorder %s1558_s29, %s1300_s22  ;;  %s1305_s3 = scalar_lea.hbm %s1744_s0, 1024 }
  0x3a   : > { %p1306_p2 = scmp.lt.s32.totalorder %s1558_s29, %s1744_s0  ;;  %p1307_p0 = scmp.lt.s32.totalorder %s1305_s3, %s1300_s22 }
  0x3b   : > { %p1303_p7 = pnand %p1302_p11, %p1301_p6 }
  0x3c   : > { %p1308_p4 = por %p1307_p0, %p1306_p2 }
  0x3d   : > { %p1304_p8 = pneg %p1303_p7 }
  0x3f   : > { %p1309_p5 = pnand %p1308_p4, %p1304_p8 }
  0x41   : > { %1312 = shalt.err (!%p1309_p5)
}
  0x42   : > { %s1313_s13 = scalar_lea.vmem %s1560_s11, 512  ;;  %s1402_s26 = smov [#allocation2]  }
  0x43   : > { %p1314_p9 = scmp.ne.s32.totalorder %s1560_s11, %s1313_s13  ;;  %s1318_s21 = sshll.u32 %s1402_s26, 4  ;;  %s1319_s21 = int_to_ptr.vmem [resolvable:$false] %s1318_s21 }
  0x44   : > { %s1320_s10 = scalar_lea.vmem %s1319_s21, 1024  ;;  %p1321_p12 = scmp.lt.s32.totalorder %s1560_s11, %s1319_s21 }
  0x45   : > { %p1316_p10 = pnand %p1314_p9, %p1302_p11  ;;  %p1322_p6 = scmp.lt.s32.totalorder %s1320_s10, %s1313_s13 }
  0x47   : > { %p1317_p1 = pneg %p1316_p10  ;;  %p1323_p7 = por %p1322_p6, %p1321_p12 }
  0x49   : > { %p1324_p13 = pnand %p1323_p7, %p1317_p1 }
  0x4b   : > { %1327 = shalt.err (!%p1324_p13)
}
  0x4c   : > { %s1403_s12 = smov 256   ;;  %s1404_s15 = smov 16  }
  0x4d   : > { %1187 = dma.hbm_to_vmem [thread:$0]  (!%p1531_p3), %s1558_s29, 512, %s1560_s11, %s1562_s18, %s1403_s12, %s1403_s12, %s1404_s15  }
  0x4e   : > { %p1775_p11 = scmp.ne.s32.totalorder %s1770_s19, 0 }
  0x4f   : > { %s1586_s22 = sand.u32 (!%p1775_p11), 1, %s1388_s28   ;;  %p1776_p13 = scmp.ne.s32.totalorder (!%p1775_p11), %s1766_s16, 0 }
  0x50   : > { %304 = sbr.rel (%p1775_p11) target bundleno = 1427 (0x593), region = 52  ;;  %s1086_s25 = sshll.u32 (!%p1775_p11), %s1586_s22, 5 }
  0x51   : > { %s307_s20 = scalar_lea.sflag (!%p1775_p11), [#allocation3], %s1586_s22  ;;  %s310_s3 = scalar_lea.vmem (!%p1775_p11), [#allocation2], %s1086_s25 }
  0x55   : > { %1371 = dma.done.wait (%p1776_p13), %s307_s20, 512  }
  0x56   : > { %1373 = vsyncadd (%p1776_p13), %s307_s20, 4294966784  ;;  %p1777_p3 = scmp.eq.s32.totalorder %s1476_s9, 0 }
  0x58   : > { %1375 = dma.done.wait (%p1777_p3), [#allocation6], 288   ;;  %p1778_p8 = pmov %p1777_p3 }
  0x59   : > { %v1600_v0 = vld [vmem:[%s310_s3] sm:$0xff]  ;;  %v1602_v1 = vld [vmem:[%s310_s3 + $0x8] sm:$0xff]  ;;  %v1604_v2 = vld [vmem:[%s310_s3 + $0x10] sm:$0xff]  ;;  %v1405_v8 = vmov 0.0   ;;  %vm1406_vm0 = vmmov 0   ;;  %v375_v11 = vlaneseq  ;;  %vm386_vm1 = vcmask 130112  }
  0x5a   : > { %1377 = vsyncadd (%p1778_p8), [#allocation6], 4294967008  ;;  %v361_v3 = vmax.f32 %v1600_v0, %v1602_v1  ;;  %v355_v4 = vadd.f32 %v1602_v1, %v1600_v0  ;;  %v1610_v5 = vld [vmem:[%s310_s3 + $0x18] sm:$0xff]  ;;  %1125 = vmatprep.subr.mxu1 %v1405_v8  ;;  %v372_v9 = vld [vmem:[%s1746_s2 + $0x8] sm:$0xff]  ;;  %1139 = vmatprep.subr.mxu0 %v1405_v8  ;;  %vm388_vm2 = vcmask 130048   ;;  %vm550_vm3 = vcmask 1041408  }
  0x5b   : > { %v364_v6 = vmax.f32 %v1604_v2, %v1610_v5  ;;  %v358_v7 = vadd.f32 %v1610_v5, %v1604_v2  ;;  %1126 = vmatpush3.msra.mxu1 %v372_v9  ;;  %v371_v10 = vld [vmem:[%s1746_s2] sm:$0xff]  ;;  %1129 = vmatprep.mubr.msk.f32.mxu1 %vm1406_vm0, %v1405_v8  ;;  %v376_v12 = vand.u32 127, %v375_v11  ;;  %v1630_v13 = vshrl.u32 %v375_v11, 7  ;;  %v370_v25 = vld [vmem:[%s1745_s1 + $0x8] sm:$0xff]  ;;  %s350_s19 = scalar_lea.vmem [#allocation8], %s1086_s25  ;;  %s1107_s14 = sshll.u32 %s1476_s9, 9 }
  0x5c   : > { %362 = vmax.xlane.f32.xlu0 %v361_v3  ;;  %356 = vadd.xlane.f32.xlu1 %v355_v4  ;;  %v369_v28 = vld [vmem:[%s1745_s1] sm:$0xff]  ;;  %vm546_vm4 = vcmask 15360   ;;  %v637_v38 = vld [vmem:[%s1749_s5 + $0x8] sm:$0xff]  ;;  %s985_s23 = sshll.u32 %s350_s19, 4  ;;  %s1700_s25 = scalar_lea.hbm %s1752_s8, %s1107_s14  ;;  %s1694_s23 = int_to_ptr.vmem [resolvable:$true] %s985_s23 }
  0x5d   : > { %1127 = vmatprep.subr.mxu1 %v1405_v8  ;;  %1141 = vmatprep.mubr.msk.f32.mxu0 %vm1406_vm0, %v1405_v8  ;;  %v381_v14 = vadd.s32 4294967288, %v376_v12  ;;  %v379_v17 = vsub.s32 %v376_v12, %v1630_v13  ;;  %v545_v31 = vld [vmem:[#allocation5] sm:$0x3]  ;;  %v635_v39 = vld [vmem:[%s1748_s4 + $0x8] sm:$0xff]  ;;  %v871_v63 = vsub.s32 0, %v1630_v13  ;;  %s972_s9 = scalar_lea.sflag [#allocation4], %s1586_s22 }
  0x5e   : > { %1128 = vmatpush3.msra.mxu1 %v371_v10  ;;  %1140 = vmatpush3.msk.msra.mxu0 %vm550_vm3, %v545_v31  ;;  %v636_v40 = vld [vmem:[%s1749_s5] sm:$0xff]  ;;  %v786_v50 = vld [vmem:[#allocation7 + $0x8] sm:$0xff]  ;;  %s1328_s26 = scalar_lea.vmem %s1694_s23, 512  ;;  %p1779_p0 = scmp.ne.s32.totalorder %s1767_s17, 0 }
  0x5f   : > { %1132 = vmatprep.subr.mxu1 %v1405_v8  ;;  %v384_v18 = vsub.s32 %v381_v14, %v1630_v13  ;;  %1151 = vmatprep.subr.mxu0 %v1405_v8  ;;  %v634_v41 = vld [vmem:[%s1748_s4] sm:$0xff]  ;;  %p1329_p2 = scmp.ne.s32.totalorder %s1694_s23, %s1328_s26  ;;  %s1407_s21 = smov [#allocation8]  }
  0x60   : > { %365 = vmax.xlane.f32.xlu0 %v364_v6  ;;  %359 = vadd.xlane.f32.xlu1 %v358_v7  ;;  %v785_v51 = vld [vmem:[#allocation7] sm:$0xff]  ;;  %s1332_s10 = sshll.u32 %s1407_s21, 4  ;;  %s1333_s10 = int_to_ptr.vmem [resolvable:$false] %s1332_s10 }
  0x61   : > { %v867_v13 = vld [vmem:[%s1751_s7] sm:$0xff]  ;;  %p1330_p4 = pnand %p1329_p2, %p1779_p0  ;;  %s1334_s12 = scalar_lea.vmem %s1333_s10, 1024 }
  0x62   : > { %p1335_p9 = scmp.lt.s32.totalorder %s1694_s23, %s1333_s10  ;;  %p1336_p10 = scmp.lt.s32.totalorder %s1334_s12, %s1328_s26 }
  0x63   : > { %p1331_p5 = pneg %p1330_p4 }
  0x64   : > { %p1337_p1 = por %p1336_p10, %p1335_p9 }
  0x66   : > { %p1338_p12 = pnand %p1337_p1, %p1331_p5 }
  0xe5   : > { %v363_v15 = vpop.xlane.xlu0 %362  ;;  %v357_v16 = vpop.xlane.xlu1 %356 }
  0xe6   : > { %v380_v21 = vrot.slane %v363_v15, %v379_v17  ;;  %v367_v22 = vmul.f32 0.00390625, %v357_v16  ;;  %v868_v15 = vld [vmem:[%s1751_s7 + $0x8] sm:$0xff] }
  0xe8   : > { %v466_v29 = vrot.slane %v367_v22, %v379_v17 }
  0xe9   : > { %v366_v19 = vpop.xlane.xlu0 %365  ;;  %v360_v20 = vpop.xlane.xlu1 %359 }
  0xea   : > { %v385_v23 = vrot.slane %v366_v19, %v384_v18  ;;  %v368_v24 = vmul.f32 0.00390625, %v360_v20 }
  0xec   : > { %v470_v26 = vrot.slane %v368_v24, %v384_v18  ;;  %v387_v27 = vsel %vm386_vm1, %v385_v23, %v380_v21 }
  0xed   : > { %1130 = vmatmul.mubr.msk.f32.vlgmr.msra.gmra.mxu1 %vm388_vm2, %v387_v27 }
  0xee   : > { %1133 = vmatpush3.msra.mxu1 %v370_v25  ;;  %1136 = vmatprep.mubr.msk.f32.mxu1 %vm1406_vm0, %v1405_v8  ;;  %v471_v30 = vsel %vm386_vm1, %v470_v26, %v466_v29 }
  0xef   : > { %1134 = vmatprep.subr.mxu1 %v1405_v8 }
  0xf0   : > { %1135 = vmatpush3.msra.mxu1 %v369_v28 }
  0xf1   : > { %1137 = vmatmul.mubr.msk.f32.vlgmr.msra.gmra.mxu1 %vm388_vm2, %v471_v30  ;;  %1144 = vmatprep.subr.mxu1 %v1405_v8 }
  0xf2   : > { %1148 = vmatprep.mubr.msk.f32.mxu1 %vm1406_vm0, %v1405_v8  ;;  %1145 = vmatpush3.msra.mxu1 %v637_v38 }
  0xf3   : > { %1146 = vmatprep.subr.mxu1 %v1405_v8 }
  0xf4   : > { %1147 = vmatpush3.msra.mxu1 %v636_v40 }
  0xf5   : > { %1158 = vmatprep.subr.mxu1 %v1405_v8 }
 0x1ad   : > { %v457_v32 = vpop.f32.mrf.mxu1 }
 0x1af   : > { %v1131_v33 = vpop.f32.mrf.mxu1 }
 0x1b1   : > { %v540_v34 = vpop.f32.mrf.mxu1 }
 0x1b2   : > { %v541_v35 = vadd.f32 %v540_v34, %v457_v32 }
 0x1b3   : > { %v1138_v36 = vpop.f32.mrf.mxu1 }
 0x1b4   : > { %v544_v37 = vmax.f32 %v541_v35, 0.0 }
 0x1b6   : > { %1142 = vmatmul.mubr.msk.f32.vlgmr.msra.gmra.mxu0 %vm546_vm4, %v544_v37 }
 0x1b7   : > { %1155 = vmatprep.mubr.msk.f32.mxu0 %vm1406_vm0, %v1405_v8  ;;  %1152 = vmatpush3.msra.mxu0 %v635_v39 }
 0x1b8   : > { %1153 = vmatprep.subr.mxu0 %v1405_v8 }
 0x1b9   : > { %1154 = vmatpush3.msra.mxu0 %v634_v41 }
 0x276   : > { %v620_v42 = vpop.f32.mrf.mxu0 }
 0x277   : > { %v1094_v43 = vmul.f32 -1.442695, %v620_v42 }
 0x278   : > { %v1143_v44 = vpop.f32.mrf.mxu0 }
 0x279   : > { %1240 = vpow2.f32 %v1094_v43 }
 0x286   : > { %v1241_v45 = vpop.eup %1240 }
 0x287   : > { %v627_v46 = vadd.f32 1.0, %v1241_v45 }
 0x289   : > { %1242 = vrcp.f32 %v627_v46 }
 0x296   : > { %v1243_v47 = vpop.eup %1242 }
 0x297   : > { %v633_v48 = vmul.f32 %v1243_v47, %v387_v27  ;;  %v631_v49 = vmul.f32 %v1243_v47, %v471_v30 }
 0x299   : > { %1149 = vmatmul.mubr.msk.f32.vlgmr.msra.gmra.mxu1 %vm388_vm2, %v633_v48  ;;  %1156 = vmatmul.mubr.msk.f32.vlgmr.msra.gmra.mxu0 %vm388_vm2, %v631_v49 }
 0x29a   : > { %1162 = vmatprep.mubr.msk.f32.mxu1 %vm1406_vm0, %v1405_v8  ;;  %954 = vmatprep.mubr.f32.mxu0 %v1405_v8 }
 0x29b   : > { %1159 = vmatpush3.msra.mxu1 %v786_v50 }
 0x29c   : > { %1160 = vmatprep.subr.mxu1 %v1405_v8 }
 0x29d   : > { %1161 = vmatpush3.msra.mxu1 %v785_v51 }
 0x359   : > { %v707_v52 = vpop.f32.mrf.mxu1  ;;  %v780_v53 = vpop.f32.mrf.mxu0 }
 0x35a   : > { %v781_v54 = vadd.f32 %v780_v53, %v707_v52 }
 0x35b   : > { %v1150_v55 = vpop.f32.mrf.mxu1  ;;  %v1157_v56 = vpop.f32.mrf.mxu0 }
 0x35c   : > { %v784_v57 = vmax.f32 %v781_v54, 0.0 }
 0x35e   : > { %1163 = vmatmul.mubr.msk.f32.vlgmr.msra.gmra.mxu1 %vm388_vm2, %v784_v57 }
 0x41e   : > { %v856_v58 = vpop.f32.mrf.mxu1 }
 0x41f   : > { %v1098_v59 = vmul.f32 -1.442695, %v856_v58 }
 0x420   : > { %v1164_v60 = vpop.f32.mrf.mxu1 }
 0x421   : > { %1244 = vpow2.f32 %v1098_v59 }
 0x42e   : > { %v1245_v61 = vpop.eup %1244 }
 0x42f   : > { %v863_v62 = vadd.f32 1.0, %v1245_v61 }
 0x431   : > { %1246 = vrcp.f32 %v863_v62 }
 0x43e   : > { %v1247_v3 = vpop.eup %1246 }
 0x43f   : > { %v866_v4 = vmul.f32 %v1247_v3, %v1243_v47 }
 0x441   : > { %v872_v6 = vrot.slane %v866_v4, %v871_v63 }
 0x443   : > { %874 = vbcast.lane.b32.xlu1 %v872_v6, 256  ;;  %878 = vbcast.lane.b32.xlu0 %v872_v6, 264 }
 0x4b5   : > { %v875_v7 = vpop.permute.xlu1 %874  ;;  %v879_v9 = vpop.permute.xlu0 %878 }
 0x4b6   : > { %v882_v10 = vmul.f32 %v879_v9, %v1604_v2  ;;  %v883_v11 = vmul.f32 %v879_v9, %v1610_v5  ;;  %v881_v12 = vmul.f32 %v875_v7, %v1602_v1  ;;  %v880_v14 = vmul.f32 %v875_v7, %v1600_v0 }
 0x4b8   : > { %918 = vmatprep.subr.mxu0 %v883_v11 }
 0x4b9   : > { %919 = vmatpush1.msra.mxu0 %v882_v10 }
 0x4ba   : > { %920 = vmatprep.subr.mxu0 %v881_v12 }
 0x4bb   : > { %921 = vmatpush1.msra.mxu0 %v880_v14 }
 0x4bc   : > { %1099 = vmatmul.mubr.msk.f32.vlgmr.msra.gmra.mxu0 %vm388_vm2, %v867_v13 }
 0x4bd   : > { %960 = vmatprep.mubr.f32.mxu0 %v1405_v8 }
 0x4c0   : > { %1100 = vmatmul.mubr.msk.f32.gmra.mxu0 %vm388_vm2, %v868_v15 }
 0x57c   : > { %v956_v16 = vpop.f32.mrf.mxu0 }
 0x57d   : > { %v957_v17 = vadd.f32 %v956_v16, %v1600_v0 }
 0x57e   : > { %v958_v18 = vpop.f32.mrf.mxu0 }
 0x57f   : > { %967 = vst [vmem:[%s350_s19] sm:$0xff] %v957_v17  ;;  %v959_v19 = vadd.f32 %v958_v18, %v1602_v1 }
 0x580   : > { %v962_v8 = vpop.f32.mrf.mxu0 }
 0x581   : > { %968 = vst [vmem:[%s350_s19 + $0x8] sm:$0xff] %v959_v19  ;;  %v963_v20 = vadd.f32 %v962_v8, %v1604_v2 }
 0x582   : > { %v964_v0 = vpop.f32.mrf.mxu0 }
 0x583   : > { %969 = vst [vmem:[%s350_s19 + $0x10] sm:$0xff] %v963_v20  ;;  %v965_v21 = vadd.f32 %v964_v0, %v1610_v5 }
 0x585   : > { %970 = vst [vmem:[%s350_s19 + $0x18] sm:$0xff] %v965_v21 }
 0x586   : > { %1341 = shalt.err (!%p1338_p12)
}
 0x587   : > { %s1342_s15 = scalar_lea.hbm %s1700_s25, 512  ;;  %s1346_s29 = scalar_lea.hbm %s1752_s8, 1024 }
 0x588   : > { %p1343_p6 = scmp.ne.s32.totalorder %s1700_s25, %s1342_s15  ;;  %p1347_p13 = scmp.lt.s32.totalorder %s1700_s25, %s1752_s8 }
 0x589   : > { %p1348_p3 = scmp.lt.s32.totalorder %s1346_s29, %s1342_s15 }
 0x58a   : > { %p1344_p7 = pnand %p1343_p6, %p1779_p0 }
 0x58b   : > { %p1349_p8 = por %p1348_p3, %p1347_p13 }
 0x58c   : > { %p1345_p11 = pneg %p1344_p7 }
 0x58e   : > { %p1350_p2 = pnand %p1349_p8, %p1345_p11 }
 0x590   : > { %1353 = shalt.err (!%p1350_p2)
}
 0x591   : > { %s1408_s18 = smov 256   ;;  %s1409_s19 = smov 16  }
 0x592   : > { %1175 = dma.vmem_to_hbm [thread:$0]  (%p1779_p0), %s1694_s23, 512, %s1700_s25, %s972_s9, %s1408_s18, %s1408_s18, %s1409_s19  }
 0x593 PF: > { %s1780_s14 = sld [smem:[#allocation15_spill]]  ;;  %s1000_s24 = sand.u32 1, %s1384_s27  }
 0x594   : > { %p1782_p5 = scmp.ge.s32.totalorder %s1396_s30, 2  ;;  %s1001_s13 = scalar_lea.sflag [#allocation4], %s1000_s24 }
 0x599   : > { %p1781_p4 = scmp.ne.s32.totalorder %s1780_s14, 0 }
 0x59b   : > { %p1189_p9 = pnand %p1782_p5, %p1781_p4 }
 0x59d   : > { %p1190_p10 = pneg %p1189_p9 }
 0x59f   : > { %1379 = dma.done.wait (%p1190_p10), %s1001_s13, 512  }
 0x5a0   : > { %1381 = vsyncadd (%p1190_p10), %s1001_s13, 4294966784  ;;  %s1783_s30 = sld [smem:[#allocation13_spill]]  ;;  %s1786_s27 = smov %s1388_s28 }
 0x5a1   : > { %s1784_s26 = sld [smem:[#allocation12_spill]] }
 0x5a2   : > { %s1785_s29 = sld [smem:[#allocation14_spill]] }
 0x5a6   : > { %p22_p1 = scmp.ge.s32.totalorder %s1783_s30, 4  }
 0x5a7   : > { %s1787_s28 = smov %s1784_s26 }
 0x5a8   :  { %24 = sbr.rel (!%p22_p1) target bundleno = 8 (0x8), region = 105 }
 0x5ad   :  { %1006 = vsyncpa [#allocation3], 1 }
 0x5ae   :  { %1008 = vsyncpa [#allocation3 + $0x1], 1 }
 0x5af   :  { %1009 = vsyncpa [#allocation6], 1 }
 0x5b0   :  { %1010 = vsyncpa [#allocation4], 1 }
 0x5b1   :  { %1012 = vsyncpa [#allocation4 + $0x1], 1 }

</bundles_post_ra>
